<compile_context>
chip_gen: v7x
topology: tpu7x:2x2x1
jax: 0.10.0
libtpu: 0.0.40
codegen_flags: <defaults>
</compile_context>

<pallas_src>
import functools

import jax
import jax.numpy as jnp
from jax.experimental import pallas as pl
from jax.experimental.pallas import tpu as pltpu


def _round_up(x, m):
    return ((x + m - 1) // m) * m


# ----------------------------------------------------------------------------
# Kernel A: batched gather only (targets is None).
# ----------------------------------------------------------------------------
def _gather_kernel(idx_ref, emb_ref, logits_ref, *, rows_per_tile):
    # idx_ref:    (N_pad,) int32 SMEM (scalar prefetch)
    # emb_ref:    (V, V_pad) f32 VMEM -- whole table, resident across steps
    # logits_ref: (R, V_pad) f32 VMEM -- output tile for this grid step
    base = pl.program_id(0) * rows_per_tile

    @pl.loop(0, rows_per_tile)
    def _(r):
        tok = idx_ref[base + r]
        logits_ref[pl.ds(r, 1), :] = emb_ref[pl.ds(tok, 1), :]


# ----------------------------------------------------------------------------
# Kernel B: batched gather + per-tile partial cross-entropy sum.
# ----------------------------------------------------------------------------
def _fused_kernel(idx_ref, emb_ref, tgt_ref, logits_ref, ploss_ref, *,
                  rows_per_tile, n_valid):
    # idx_ref:    (N_pad,) int32 SMEM (scalar prefetch)
    # emb_ref:    (V, V_pad) f32 VMEM -- whole table, resident across steps
    # tgt_ref:    (R, 1) int32 VMEM   -- targets for this tile
    # logits_ref: (R, V_pad) f32 VMEM -- output logits tile
    # ploss_ref:  (1, 1) f32 VMEM     -- per-tile partial loss sum
    base = pl.program_id(0) * rows_per_tile

    # In-kernel row gather from the VMEM-resident table.
    @pl.loop(0, rows_per_tile)
    def _(r):
        tok = idx_ref[base + r]
        logits_ref[pl.ds(r, 1), :] = emb_ref[pl.ds(tok, 1), :]

    rows = logits_ref[...]                                        # (R, V_pad)

    # Numerically stable logsumexp over the lane (vocab) axis.
    # Padded vocab lanes hold -1e30 so exp() contributes 0.
    m = jnp.max(rows, axis=-1, keepdims=True)                     # (R, 1)
    lse = jnp.log(jnp.sum(jnp.exp(rows - m), axis=-1, keepdims=True)) + m

    # Vectorized target-logit extraction for all R rows at once.
    tgt = tgt_ref[...]                                            # (R, 1)
    col = jax.lax.broadcasted_iota(jnp.int32, rows.shape, 1)      # (R, V_pad)
    tgt_logit = jnp.sum(jnp.where(col == tgt, rows, 0.0),
                        axis=-1, keepdims=True)                   # (R, 1)

    # Mask out padded rows (row index >= n_valid).
    row_ids = base + jax.lax.broadcasted_iota(
        jnp.int32, (rows.shape[0], 1), 0)                          # (R, 1)
    per_row = jnp.where(row_ids < n_valid, lse - tgt_logit, 0.0)

    ploss_ref[...] = jnp.sum(per_row, axis=(0, 1), keepdims=True)  # (1, 1)


# ----------------------------------------------------------------------------
# Wrapper mirroring NGramLanguageModel.forward
# ----------------------------------------------------------------------------
def ngram_forward(embedding, indices, targets=None):
    V = embedding.shape[0]
    B, T = indices.shape
    N = B * T

    # Lane-dense vocab padding (padded lanes = -1e30 so logsumexp ignores them).
    V_pad = _round_up(V, 128)
    emb = embedding.astype(jnp.float32)
    if V_pad != V:
        emb = jnp.pad(emb, ((0, 0), (0, V_pad - V)), constant_values=-1e30)

    # Rows per tile: multiple of 8, capped at 512 (tiles are small vs VMEM).
    R = min(512, _round_up(N, 8))
    N_pad = _round_up(N, R)
    num_tiles = N_pad // R

    idx_flat = jnp.pad(indices.reshape(-1).astype(jnp.int32), (0, N_pad - N))

    compiler_params = pltpu.CompilerParams(
        dimension_semantics=("parallel",),     # partial sums -> no reduction axis
        vmem_limit_bytes=32 * 1024 * 1024,
    )

    emb_spec = pl.BlockSpec((V, V_pad), lambda t, idx: (0, 0))  # resident table
    logits_spec = pl.BlockSpec((R, V_pad), lambda t, idx: (t, 0))

    if targets is None:
        logits = pl.pallas_call(
            functools.partial(_gather_kernel, rows_per_tile=R),
            out_shape=jax.ShapeDtypeStruct((N_pad, V_pad), jnp.float32),
            grid_spec=pltpu.PrefetchScalarGridSpec(
                num_scalar_prefetch=1,
                grid=(num_tiles,),
                in_specs=[emb_spec],
                out_specs=logits_spec,
            ),
            compiler_params=compiler_params,
        )(idx_flat, emb)
        return logits[:N, :V].reshape(B, T, V), None

    tgt_col = jnp.pad(targets.reshape(-1).astype(jnp.int32),
                      (0, N_pad - N)).reshape(N_pad, 1)

    logits, ploss = pl.pallas_call(
        functools.partial(_fused_kernel, rows_per_tile=R, n_valid=N),
        out_shape=(jax.ShapeDtypeStruct((N_pad, V_pad), jnp.float32),
                   jax.ShapeDtypeStruct((num_tiles, 1), jnp.float32)),
        grid_spec=pltpu.PrefetchScalarGridSpec(
            num_scalar_prefetch=1,
            grid=(num_tiles,),
            in_specs=[emb_spec,
                      pl.BlockSpec((R, 1), lambda t, idx: (t, 0))],
            out_specs=(logits_spec,
                       pl.BlockSpec((1, 1), lambda t, idx: (t, 0))),
        ),
        compiler_params=compiler_params,
    )(idx_flat, emb, tgt_col)

    # Mean over the N valid rows is applied here (no 1/N baked into the kernel).
    loss = jnp.sum(ploss) / N
    # PyTorch returns the flattened (N, V) logits when targets are given.
    return logits[:N, :V], loss


# ----------------------------------------------------------------------------
# Pure-JAX reference for correctness check
# ----------------------------------------------------------------------------
def _ref_forward(embedding, indices, targets):
    logits = embedding[indices]                          # (B, T, V)
    V = embedding.shape[0]
    flat = logits.reshape(-1, V)
    t = targets.reshape(-1)
    lse = jax.scipy.special.logsumexp(flat, axis=-1)
    tl = jnp.take_along_axis(flat, t[:, None], axis=-1)[:, 0]
    return flat, jnp.mean(lse - tl)


if __name__ == "__main__":
    # TODO(synk): generate() (autoregressive multinomial sampling loop) is
    # host-side control flow and is not part of the forward pass kernel.
    vocab_size = 128
    n_gram = 3          # unused in forward (only affects generate)
    B, T = 2, 8

    key = jax.random.PRNGKey(0)
    k_emb, k_idx, k_tgt = jax.random.split(key, 3)

    # Deterministic synthetic parameters (nn.Embedding weight: (V, V) float32)
    embedding = jax.random.normal(k_emb, (vocab_size, vocab_size),
                                  dtype=jnp.float32)
    indices = jax.random.randint(k_idx, (B, T), 0, vocab_size, dtype=jnp.int32)
    targets = jax.random.randint(k_tgt, (B, T), 0, vocab_size, dtype=jnp.int32)

    # With targets: (flattened (N, V) logits, scalar loss)
    logits, loss = ngram_forward(embedding, indices, targets)
    jax.block_until_ready((logits, loss))

    # Without targets: (B, T, V) logits, loss is None
    logits_nt, loss_nt = ngram_forward(embedding, indices, None)
    jax.block_until_ready(logits_nt)
    assert loss_nt is None
    assert logits_nt.shape == (B, T, vocab_size)

    # Correctness check against pure-JAX reference
    ref_logits, ref_loss = _ref_forward(embedding, indices, targets)
    assert jnp.allclose(logits, ref_logits, atol=1e-5, rtol=1e-5)
    assert jnp.allclose(logits_nt.reshape(-1, vocab_size), ref_logits,
                        atol=1e-5, rtol=1e-5)
    assert jnp.allclose(loss, ref_loss, atol=1e-4, rtol=1e-4)

    print("KERNEL_OK")
</pallas_src>

<mosaic_0001>
module attributes {stable_mosaic.version = 11 : i64} {
  func.func @_fused_kernel(%arg0: i32, %arg1: memref<16xi32, #tpu.memory_space<smem>>, %arg2: memref<128x128xf32, #tpu.memory_space<vmem>>, %arg3: memref<16x1xi32, #tpu.memory_space<vmem>>, %arg4: memref<16x128xf32, #tpu.memory_space<vmem>>, %arg5: memref<1x1xf32, #tpu.memory_space<vmem>>) attributes {dimension_semantics = [#tpu.dimension_semantics<parallel>], iteration_bounds = array<i64: 1>, scalar_prefetch = 1 : i64, scratch_operands = 0 : i64, tpu.core_type = #tpu.core_type<tc>, window_params = [{pipeline_mode = #tpu.pipeline_mode<synchronous>, transform_indices = @transform_0, window_bounds = array<i64: 128, 128>}, {transform_indices = @transform_1, window_bounds = array<i64: 16, 1>}, {transform_indices = @transform_2, window_bounds = array<i64: 16, 128>}, {transform_indices = @transform_3, window_bounds = array<i64: 1, 1>}]} {
    %c16_i32 = arith.constant 16 : i32
    %0 = arith.muli %arg0, %c16_i32 : i32
    %c0_i32 = arith.constant 0 : i32
    %c16_i32_0 = arith.constant 16 : i32
    %1 = arith.addi %c0_i32, %c16_i32_0 : i32
    %c1_i32 = arith.constant 1 : i32
    scf.for %arg6 = %c0_i32 to %1 step %c1_i32  : i32 {
      %c1_i32_13 = arith.constant 1 : i32
      %34 = arith.muli %arg6, %c1_i32_13 : i32
      %c0_i32_14 = arith.constant 0 : i32
      %35 = arith.addi %c0_i32_14, %34 : i32
      %36 = arith.addi %0, %35 : i32
      %37 = arith.index_cast %36 : i32 to index
      %38 = memref.load %arg1[%37] : memref<16xi32, #tpu.memory_space<smem>>
      %39 = arith.index_cast %38 : i32 to index
      %c0_15 = arith.constant 0 : index
      %40 = vector.load %arg2[%39, %c0_15] : memref<128x128xf32, #tpu.memory_space<vmem>>, vector<1x128xf32>
      %41 = arith.index_cast %35 : i32 to index
      %c0_16 = arith.constant 0 : index
      %42 = vector.load %arg4[%41, %c0_16] : memref<16x128xf32, #tpu.memory_space<vmem>>, vector<1x128xf32>
      tpu.vector_store %arg4[%41, %c0_16], %40 {strides = array<i32>} : memref<16x128xf32, #tpu.memory_space<vmem>>, vector<1x128xf32>,
    }
    %c16_i32_1 = arith.constant 16 : i32
    %c0 = arith.constant 0 : index
    %c0_2 = arith.constant 0 : index
    %2 = vector.load %arg4[%c0, %c0_2] : memref<16x128xf32, #tpu.memory_space<vmem>>, vector<16x128xf32>
    %cst = arith.constant dense<0xFF800000> : vector<16xf32>
    %3 = vector.multi_reduction <maximumf>, %2, %cst [1] : vector<16x128xf32> to vector<16xf32>
    %4 = vector.shape_cast %3 : vector<16xf32> to vector<16x1xf32>
    %5 = vector.broadcast %4 : vector<16x1xf32> to vector<16x128xf32>
    %6 = arith.subf %2, %5 : vector<16x128xf32>
    %7 = math.exp %6 : vector<16x128xf32>
    %cst_3 = arith.constant dense<0.000000e+00> : vector<16xf32>
    %8 = vector.multi_reduction <add>, %7, %cst_3 [1] : vector<16x128xf32> to vector<16xf32>
    %9 = vector.shape_cast %8 : vector<16xf32> to vector<16x1xf32>
    %10 = math.log %9 : vector<16x1xf32>
    %11 = arith.addf %10, %4 : vector<16x1xf32>
    %c0_4 = arith.constant 0 : index
    %c0_5 = arith.constant 0 : index
    %12 = vector.load %arg3[%c0_4, %c0_5] : memref<16x1xi32, #tpu.memory_space<vmem>>, vector<16x1xi32>
    %13 = tpu.iota {dimensions = array<i32: 1>} : vector<16x128xi32>
    %14 = vector.broadcast %12 : vector<16x1xi32> to vector<16x128xi32>
    %15 = arith.cmpi eq, %13, %14 : vector<16x128xi32>
    %cst_6 = arith.constant 0.000000e+00 : f32
    %16 = vector.broadcast %cst_6 : f32 to vector<16x128xf32>
    %17 = arith.select %15, %2, %16 : vector<16x128xi1>, vector<16x128xf32>
    %cst_7 = arith.constant dense<0.000000e+00> : vector<16xf32>
    %18 = vector.multi_reduction <add>, %17, %cst_7 [1] : vector<16x128xf32> to vector<16xf32>
    %19 = vector.shape_cast %18 : vector<16xf32> to vector<16x1xf32>
    %20 = tpu.iota {dimensions = array<i32: 0>} : vector<16x1xi32>
    %21 = vector.broadcast %0 : i32 to vector<16x1xi32>
    %22 = arith.addi %21, %20 : vector<16x1xi32>
    %c16_i32_8 = arith.constant 16 : i32
    %23 = vector.broadcast %c16_i32_8 : i32 to vector<16x1xi32>
    %24 = arith.cmpi slt, %22, %23 : vector<16x1xi32>
    %25 = arith.subf %11, %19 : vector<16x1xf32>
    %cst_9 = arith.constant 0.000000e+00 : f32
    %26 = vector.broadcast %cst_9 : f32 to vector<16x1xf32>
    %27 = arith.select %24, %25, %26 : vector<16x1xi1>, vector<16x1xf32>
    %28 = vector.shape_cast %27 : vector<16x1xf32> to vector<1x16x1xf32>
    %cst_10 = arith.constant dense<0.000000e+00> : vector<1xf32>
    %29 = vector.multi_reduction <add>, %28, %cst_10 [1, 2] : vector<1x16x1xf32> to vector<1xf32>
    %30 = vector.shape_cast %29 : vector<1xf32> to vector<1x1x1xf32>
    %31 = vector.extract %30[0, 0, 0] : f32 from vector<1x1x1xf32>
    %32 = vector.broadcast %31 : f32 to vector<1x1xf32>
    %c0_11 = arith.constant 0 : index
    %c0_12 = arith.constant 0 : index
    %33 = vector.load %arg5[%c0_11, %c0_12] : memref<1x1xf32, #tpu.memory_space<vmem>>, vector<1x1xf32>
    tpu.vector_store %arg5[%c0_11, %c0_12], %32 {strides = array<i32>} : memref<1x1xf32, #tpu.memory_space<vmem>>, vector<1x1xf32>,
    return
  }
  func.func @transform_0(%arg0: i32, %arg1: memref<16xi32, #tpu.memory_space<smem>>) -> (i32, i32) {
    %c0_i32 = arith.constant 0 : i32
    %c0_i32_0 = arith.constant 0 : i32
    %c0_i32_1 = arith.constant 0 : i32
    return %c0_i32, %c0_i32_0 : i32, i32
  }
  func.func @transform_1(%arg0: i32, %arg1: memref<16xi32, #tpu.memory_space<smem>>) -> (i32, i32) {
    %c0_i32 = arith.constant 0 : i32
    %c0_i32_0 = arith.constant 0 : i32
    return %arg0, %c0_i32 : i32, i32
  }
  func.func @transform_2(%arg0: i32, %arg1: memref<16xi32, #tpu.memory_space<smem>>) -> (i32, i32) {
    %c0_i32 = arith.constant 0 : i32
    %c0_i32_0 = arith.constant 0 : i32
    return %arg0, %c0_i32 : i32, i32
  }
  func.func @transform_3(%arg0: i32, %arg1: memref<16xi32, #tpu.memory_space<smem>>) -> (i32, i32) {
    %c0_i32 = arith.constant 0 : i32
    %c0_i32_0 = arith.constant 0 : i32
    return %arg0, %c0_i32 : i32, i32
  }
}

</mosaic_0001>

<bundles_post_ra>
// kernel: tpu_custom_call.1
= control target key start
LH: loop header
LB: loop body
LE: loop exit
PB: predicated region body
PF: predicated region fallthrough
CT: control target
= control target key end

     0   :  { %s359_s0 = inlined_call_operand.vmem [shape: s32[16], index: 0, kind: input, shape index: {}]   ;;  %s360_s1 = inlined_call_operand.hbm [shape: f32[128,128], index: 1, kind: input, shape index: {}]   ;;  %s361_s2 = inlined_call_operand.vmem [shape: s32[16,1], index: 2, kind: input, shape index: {}]   ;;  %s362_s3 = inlined_call_operand.hbm [shape: f32[16,128], index: 3, kind: output, shape index: {0}]   ;;  %s363_s4 = inlined_call_operand.hbm [shape: f32[1,1], index: 4, kind: output, shape index: {1}]  }
   0x1   :  { %s10_s17 = sshll.u32 %s359_s0, 4  ;;  %s11_s17 = int_to_ptr.vmem [resolvable:$true] %s10_s17 }
   0x2   :  { %s182_s18 = scalar_lea.vmem %s11_s17, 16  ;;  %p187_p1 = scmp.lt.s32.totalorder %s11_s17, %s11_s17 }
   0x3   :  { %p183_p0 = scmp.ne.s32.totalorder %s11_s17, %s182_s18  ;;  %p188_p2 = scmp.lt.s32.totalorder %s182_s18, %s182_s18 }
   0x5   :  { %p189_p3 = por %p188_p2, %p187_p1 }
   0x7   :  { %p190_p4 = pnand %p189_p3, %p183_p0 }
   0x9   :  { %193 = shalt.err (!%p190_p4)  }
   0xa   :  { %s276_s19 = smov [#allocation3]  }
   0xb   :  { %13 = dma.vmem_to_smem %s11_s17, 16, %s276_s19, [#allocation2] }
   0xc   :  { %264 = dma.done.wait [#allocation2], 16 }
   0xd   :  { %265 = vsyncadd [#allocation2], 4294967280 }
   0xe   :  { %15 = sfence }
   0xf   :  { %16 = vsyncpa [#allocation5], 0 }
  0x10   :  { %17 = vsyncpa [#allocation6], 0 }
  0x11   :  { %18 = vsyncpa [#allocation9], 0  ;;  %s277_s20 = smov [#allocation4]   ;;  %s194_s23 = scalar_lea.hbm %s360_s1, 2048 }
  0x12   :  { %s24_s21 = sshll.u32 %s277_s20, 4  ;;  %p195_p5 = scmp.ne.s32.totalorder %s360_s1, %s194_s23  ;;  %s25_s21 = int_to_ptr.vmem [resolvable:$true] %s24_s21 }
  0x13   :  { %p198_p6 = scmp.lt.u32.totalorder %s194_s23, %s360_s1 }
  0x15   :  { %p200_p7 = pnand %p198_p6, %p195_p5 }
  0x17   :  { %203 = shalt.err (!%p200_p7)
}
  0x18   :  { %s204_s28 = scalar_lea.vmem %s25_s21, 2048  ;;  %p209_p9 = scmp.lt.s32.totalorder %s25_s21, %s25_s21 }
  0x19   :  { %p205_p8 = scmp.ne.s32.totalorder %s25_s21, %s204_s28  ;;  %p210_p10 = scmp.lt.s32.totalorder %s204_s28, %s204_s28 }
  0x1b   :  { %p211_p11 = por %p210_p10, %p209_p9 }
  0x1d   :  { %p212_p12 = pnand %p211_p11, %p205_p8 }
  0x1f   :  { %215 = shalt.err (!%p212_p12)
}
  0x20   :  { %s278_s29 = smov 128   ;;  %s279_s30 = smov 8  }
  0x21   :  { %30 = dma.hbm_to_vmem [thread:$0]  %s360_s1, 2048, %s25_s21, [#allocation5], %s278_s29, %s278_s29, %s279_s30  }
  0x22   :  { %266 = dma.done.wait [#allocation5], 2048  }
  0x23   :  { %267 = vsyncadd [#allocation5], 4294965248  ;;  %s272_s7 = smov 0  }
  0x24 LB: > { %s44_s8 = sld [smem:[#allocation3 + %s274_s7]]  ;;  %s47_s10 = scalar_lea.vmem [#allocation7], %s274_s7  ;;  %s274_s7 = sphi %s272_s7, %s42_s7  }
  0x25   : > { %s42_s7 = sadd.s32 1, %s274_s7  }
  0x26   : > { %p39_p13 = scmp.ge.s32.totalorder %s42_s7, 16  }
  0x27   :  { %v71_v2 = vld [vmem:[%s361_s2] sm:$0xff] (%p39_p13)  ;;  %v280_v3 = vmov (%p39_p13), 0   ;;  %v72_v5 = vld [vmem:[%s361_s2 + $0x8] sm:$0xff] (%p39_p13)  ;;  %v73_v11 = vlaneseq (%p39_p13)  ;;  %vm101_vm2 = vcmask (%p39_p13), 7168   ;;  %s281_s2 = smov (%p39_p13), [#allocation7]  }
  0x28   :  { %41 = sbr.rel (!%p39_p13) target bundleno = 36 (0x24), region = 49  ;;  %172 = vset.pattern.permute.xlu1 (%p39_p13), %v280_v3  ;;  %173 = vset.pattern.permute.xlu0 (%p39_p13), %v280_v3  ;;  %s122_s14 = sshll.u32 (%p39_p13), %s281_s2, 4  ;;  %s123_s14 = int_to_ptr.vmem [resolvable:$true] %s122_s14 }
  0x29   :  { %76 = vperm.xlu1 (%p39_p13), %172, %v71_v2   ;;  %v74_v14 = vand.u32 (%p39_p13), 127, %v73_v11  ;;  %s216_s15 = scalar_lea.vmem (%p39_p13), %s123_s14, 256  ;;  %p221_p1 = scmp.lt.s32.totalorder (%p39_p13), %s123_s14, %s123_s14 }
  0x2a   : > { %s45_s9 = scalar_lea.vmem [#allocation4], %s44_s8  ;;  %p217_p0 = scmp.ne.s32.totalorder (%p39_p13), %s123_s14, %s216_s15 }
  0x2b   : > { %v46_v0 = vld [vmem:[%s45_s9] sm:$0x1]  ;;  %p222_p2 = scmp.lt.s32.totalorder (%p39_p13), %s216_s15, %s216_s15 }
  0x2c   : > { %48 = vst [vmem:[%s47_s10] sm:$0x1] %v46_v0 }
  0x2d   :  { %79 = vperm.xlu1 (%p39_p13), %172, %v72_v5   ;;  %p223_p3 = por (%p39_p13), %p222_p2, %p221_p1 }
  0x2f   :  { %p224_p4 = pnand %p223_p3, %p217_p0 }
  0x33   :  { %v49_v1 = vld [vmem:[#allocation7] sm:$0xff]  ;;  %v50_v4 = vld [vmem:[#allocation7 + $0x8] sm:$0xff] }
  0x34   :  { %51 = vmax.xlane.f32.xlu0 %v49_v1 }
  0x38   :  { %53 = vmax.xlane.f32.xlu0 %v50_v4 }
  0xa8   :  { %v77_v13 = vpop.permute.xlu1 %76 }
  0xa9   :  { %vm81_vm0 = vcmp.eq.s32.totalorder %v74_v14, %v77_v13 }
  0xaa   :  { %v83_v17 = vsel %vm81_vm0, %v49_v1, 0.0 }
  0xac   :  { %v80_v16 = vpop.permute.xlu1 %79 }
  0xad   :  { %vm82_vm1 = vcmp.eq.s32.totalorder %v74_v14, %v80_v16 }
  0xae   :  { %v84_v19 = vsel %vm82_vm1, %v50_v4, 0.0 }
  0xc1   :  { %v52_v6 = vpop.xlane.xlu0 %51 }
  0xc2   :  { %v55_v7 = vsub.f32 %v49_v1, %v52_v6 }
  0xc4   :  { %v57_v8 = vmul.f32 1.442695, %v55_v7 }
  0xc5   :  { %v54_v9 = vpop.xlane.xlu0 %53 }
  0xc6   :  { %174 = vpow2.f32 %v57_v8  ;;  %v56_v10 = vsub.f32 %v50_v4, %v54_v9 }
  0xc8   :  { %v59_v12 = vmul.f32 1.442695, %v56_v10 }
  0xca   :  { %176 = vpow2.f32 %v59_v12 }
  0xd0   :  { %v175_v15 = vpop.eup %174 }
  0xd1   :  { %61 = vadd.xlane.f32.xlu0 %v175_v15 }
  0xd4   :  { %v177_v18 = vpop.eup %176 }
  0xd5   :  { %63 = vadd.xlane.f32.xlu1 %v177_v18  ;;  %85 = vadd.xlane.f32.xlu0 %v83_v17 }
  0xd9   :  { %87 = vadd.xlane.f32.xlu0 %v84_v19 }
 0x15e   :  { %v62_v20 = vpop.xlane.xlu0 %61 }
 0x15f   :  { %178 = vlog2.f32 %v62_v20 }
 0x162   :  { %v64_v21 = vpop.xlane.xlu1 %63  ;;  %v86_v24 = vpop.xlane.xlu0 %85 }
 0x163   :  { %180 = vlog2.f32 %v64_v21 }
 0x166   :  { %v88_v30 = vpop.xlane.xlu0 %87 }
 0x169   :  { %v179_v22 = vpop.eup %178 }
 0x16a   :  { %v66_v23 = vmul.f32 0.6931472, %v179_v22 }
 0x16c   :  { %v69_v25 = vadd.f32 %v66_v23, %v52_v6 }
 0x16d   :  { %v181_v26 = vpop.eup %180 }
 0x16e   :  { %v68_v27 = vmul.f32 0.6931472, %v181_v26  ;;  %v97_v28 = vsub.f32 %v69_v25, %v86_v24 }
 0x170   :  { %v70_v29 = vadd.f32 %v68_v27, %v54_v9  ;;  %v102_v32 = vsel %vm101_vm2, %v97_v28, 0.0 }
 0x172   :  { %v98_v31 = vsub.f32 %v70_v29, %v88_v30 }
 0x174   :  { %v103_v33 = vsel %vm101_vm2, %v98_v31, 0.0 }
 0x175   :  { %v104_v34 = vadd.f32 %v103_v33, %v102_v32 }
 0x177   :  { %105 = vadd.xlane.f32.xlu0 %v104_v34 }
 0x178   :  { %227 = shalt.err (!%p224_p4)
}
 0x179   :  { %s228_s18 = scalar_lea.hbm %s362_s3, 256 }
 0x17a   :  { %p229_p5 = scmp.ne.s32.totalorder %s362_s3, %s228_s18  ;;  %p232_p6 = scmp.lt.u32.totalorder %s228_s18, %s362_s3 }
 0x17c   :  { %p234_p7 = pnand %p232_p6, %p229_p5 }
 0x17e   :  { %237 = shalt.err (!%p234_p7)
}
 0x17f   :  { %128 = dma.vmem_to_hbm [thread:$0]  %s123_s14, 256, %s362_s3, [#allocation6], %s278_s29, %s278_s29, %s279_s30   ;;  %vm115_vm3 = vcmask 0  }
 0x180   :  { %s282_s24 = smov [#allocation8]  }
 0x181   :  { %s135_s25 = sshll.u32 %s282_s24, 4  ;;  %s136_s25 = int_to_ptr.vmem [resolvable:$true] %s135_s25 }
 0x182   :  { %s238_s27 = scalar_lea.vmem %s136_s25, 16  ;;  %s242_s28 = scalar_lea.vmem %s136_s25, 32 }
 0x183   :  { %p239_p8 = scmp.ne.s32.totalorder %s136_s25, %s238_s27  ;;  %p243_p9 = scmp.lt.s32.totalorder %s136_s25, %s136_s25 }
 0x184   :  { %p244_p10 = scmp.lt.s32.totalorder %s242_s28, %s238_s27 }
 0x186   :  { %p245_p11 = por %p244_p10, %p243_p9 }
 0x188   :  { %p246_p12 = pnand %p245_p11, %p239_p8 }
 0x204   :  { %v106_v35 = vpop.xlane.xlu0 %105 }
 0x205   :  { %v107_v36 = vrot.slane %v106_v35, 4 }
 0x207   :  { %v108_v37 = vadd.f32 %v107_v36, %v106_v35 }
 0x209   :  { %v109_v38 = vrot.slane %v108_v37, 2 }
 0x20b   :  { %v110_v39 = vadd.f32 %v109_v38, %v108_v37 }
 0x20d   :  { %v111_v40 = vrot.slane %v110_v39, 1 }
 0x20f   :  { %v112_v41 = vadd.f32 %v111_v40, %v110_v39 }
 0x211   :  { %155 = vpush %v112_v41 }
 0x242   :  { %s156_s26 = spop %155 }
 0x243   :  { %v114_v42 = vstv %s156_s26 }
 0x244   :  { %116 = vst.msk [vmem:[#allocation8] sm:$0x1] %vm115_vm3, %v114_v42 }
 0x245   :  { %249 = shalt.err (!%p246_p12)
}
 0x246   :  { %s250_s30 = scalar_lea.hbm %s363_s4, 16 }
 0x247   :  { %p251_p13 = scmp.ne.s32.totalorder %s363_s4, %s250_s30  ;;  %p254_p0 = scmp.lt.u32.totalorder %s250_s30, %s363_s4 }
 0x249   :  { %p256_p1 = pnand %p254_p0, %p251_p13 }
 0x24b   :  { %259 = shalt.err (!%p256_p1)
}
 0x24c   :  { %138 = dma.vmem_to_hbm [thread:$0]  %s136_s25, 16, %s363_s4, [#allocation9]  }
 0x24d   :  { %268 = dma.done.wait [#allocation6], 256  }
 0x24e   :  { %269 = vsyncadd [#allocation6], 4294967040 }
 0x24f   :  { %270 = dma.done.wait [#allocation9], 16  }
 0x250   :  { %271 = vsyncadd [#allocation9], 4294967280 }
 0x251   :  { %145 = vsyncpa [#allocation5], 1 }
 0x252   :  { %146 = vsyncpa [#allocation6], 1 }
 0x253   :  { %147 = vsyncpa [#allocation9], 1 }

</bundles_post_ra>
